<compile_context>
chip_gen: v5e
topology: v5e:2x2
jax: 0.10.0
libtpu: 0.0.40
codegen_flags: <defaults>
</compile_context>

<pallas_src>
import jax
import jax.numpy as jnp
from jax.experimental import pallas as pl
from jax.experimental.pallas import tpu as pltpu


# ---------------------------------------------------------------------------
# Kernels.  x_ref is either (C_in, T) [batch squeezed] or (BN, C_in, T)
# [batch folded into the block]; the rank is resolved at trace time.
# ---------------------------------------------------------------------------

def _conv1x1_mxu_kernel(x_ref, w_ref, b_ref, o_ref):
    w = w_ref[...]                                    # (C_out, C_in)
    b = b_ref[...].astype(jnp.float32)                # (C_out, 1)

    def one(x2d):                                     # (C_in, T) -> (C_out, T)
        acc = jnp.dot(w, x2d, preferred_element_type=jnp.float32)
        return (acc + b).astype(o_ref.dtype)

    if len(x_ref.shape) == 2:                         # squeezed batch dim
        o_ref[...] = one(x_ref[...])
    else:                                             # (BN, C_in, T): unroll BN
        for n in range(x_ref.shape[0]):
            o_ref[n] = one(x_ref[n])


def _conv1x1_vpu_kernel(x_ref, w_ref, b_ref, o_ref):
    # Tiny-channel path (C_in <= 8 and C_out <= 32): a K<=8 matmul wastes the
    # MXU and pays result-FIFO latency; unroll C_in as broadcast FMAs instead.
    w = w_ref[...].astype(jnp.float32)                # (C_out, C_in)
    b = b_ref[...].astype(jnp.float32)                # (C_out, 1)
    c_in = w.shape[1]

    def one(x2d):                                     # (C_in, T) -> (C_out, T)
        acc = w[:, 0:1] * x2d[0:1, :] + b
        for c in range(1, c_in):                      # unrolled (c_in tiny)
            acc = acc + w[:, c:c + 1] * x2d[c:c + 1, :]
        return acc.astype(o_ref.dtype)

    if len(x_ref.shape) == 2:
        o_ref[...] = one(x_ref[...].astype(jnp.float32))
    else:
        for n in range(x_ref.shape[0]):
            o_ref[n] = one(x_ref[n].astype(jnp.float32))


# ---------------------------------------------------------------------------
# VMEM-budget-driven tiling.
# ---------------------------------------------------------------------------

def _round_up(v, m):
    return -(-v // m) * m


def _vmem_budget_bytes():
    # ~half of physical VMEM, capped at 48 MiB.
    #   v5e / v6e (128 MiB physical) -> 48 MiB budget
    #   v7x       ( 64 MiB physical) -> 32 MiB budget
    try:
        cap = int(pltpu.get_tpu_info().vmem_capacity_bytes)
    except Exception:
        cap = 64 * 1024 * 1024                        # conservative (v7x physical)
    return min(cap // 2, 48 * 1024 * 1024)


def _pick_tile_hw(hw, bn, c_in, c_out, itemsize, avail_bytes):
    """Largest spatial tile whose double-buffered x+out blocks fit avail_bytes.

    Prefers a multiple of 128 that divides hw (avoids masked-tail waste).
    Returns None if even a 128-lane tile does not fit.
    """
    per_lane = bn * (_round_up(c_in, 8) + _round_up(c_out, 8)) * itemsize
    max_tile = avail_bytes // (2 * per_lane)          # 2 = double-buffered x+out
    if hw <= max_tile:
        return hw                                     # full dim: always legal
    max_tile = (max_tile // 128) * 128
    if max_tile < 128:
        return None
    for cand in range(int(max_tile), 127, -128):      # prefer a divisor of hw
        if hw % cand == 0:
            return cand
    return int(max_tile)


# ---------------------------------------------------------------------------
# Wrapper: forward of FPNBottleneckBlock == nn.Conv2d(C_in, C_out, k=1).
# ---------------------------------------------------------------------------

def fpn_bottleneck_block(x_nchw, weight, bias):
    """x: (N, C_in, H, W); weight: (C_out, C_in, 1, 1); bias: (C_out,).
    Returns (N, C_out, H, W) with the same dtype as x."""
    N, C_in, H, W = x_nchw.shape
    C_out = weight.shape[0]
    HW = H * W
    itemsize = jnp.dtype(x_nchw.dtype).itemsize

    # Contiguous reshapes only.
    x = x_nchw.reshape(N, C_in, HW)
    w = weight.reshape(C_out, C_in)
    b = bias.reshape(C_out, 1)

    # ---- budget ------------------------------------------------------------
    budget = _vmem_budget_bytes()
    # Assume two buffers for weight/bias (worst case: conservative fallback
    # path below) so both spec variants fit the same budget.
    w_bytes = _round_up(C_out, 8) * _round_up(C_in, 128) * jnp.dtype(weight.dtype).itemsize
    b_bytes = _round_up(C_out, 8) * 128 * jnp.dtype(bias.dtype).itemsize
    slack = 2 * 1024 * 1024
    avail = max(budget - 2 * (w_bytes + b_bytes) - slack, 0)

    # Fold the whole batch into the block on small spatial levels so the
    # ~0.35us per-grid-step overhead is amortized; grid is spatial-only then.
    fold_batch = (N > 1) and (HW <= 1024)
    tile_hw = None
    if fold_batch:
        tile_hw = _pick_tile_hw(HW, N, C_in, C_out, itemsize, avail)
        if tile_hw is None:
            fold_batch = False
    if not fold_batch:
        tile_hw = _pick_tile_hw(HW, 1, C_in, C_out, itemsize, avail)
        if tile_hw is None:                            # gigantic channels: minimum legal tile
            tile_hw = min(HW, 128)
    bn = N if fold_batch else 1
    n_tiles = pl.cdiv(HW, tile_hw)

    # Resident footprint -> vmem_limit_bytes (also covers the min-tile case).
    blocks_bytes = (2 * bn * (_round_up(C_in, 8) + _round_up(C_out, 8))
                    * _round_up(tile_hw, 128) * itemsize)
    vmem_limit = int(max(budget, blocks_bytes + 2 * (w_bytes + b_bytes) + slack))

    use_vpu = (C_in <= 8) and (C_out <= 32)
    kernel = _conv1x1_vpu_kernel if use_vpu else _conv1x1_mxu_kernel
    out_shape = jax.ShapeDtypeStruct((N, C_out, HW), x_nchw.dtype)

    def call(fancy):
        # fancy=True : Buffered(1) weight/bias + squeezed batch dim on the
        #              non-folded path.  fancy=False: conservative specs,
        #              identical numerics (compile-safety fallback).
        wb_kw = dict(pipeline_mode=pl.Buffered(1)) if fancy else {}
        if fold_batch:
            grid = (n_tiles,)
            x_spec = pl.BlockSpec((N, C_in, tile_hw), lambda j: (0, 0, j))
            o_spec = pl.BlockSpec((N, C_out, tile_hw), lambda j: (0, 0, j))
            w_spec = pl.BlockSpec((C_out, C_in), lambda j: (0, 0), **wb_kw)
            b_spec = pl.BlockSpec((C_out, 1), lambda j: (0, 0), **wb_kw)
            dims = ("parallel",)
        else:
            lead = pl.Squeezed() if fancy else 1
            grid = (N, n_tiles)
            x_spec = pl.BlockSpec((lead, C_in, tile_hw), lambda n, j: (n, 0, j))
            o_spec = pl.BlockSpec((lead, C_out, tile_hw), lambda n, j: (n, 0, j))
            w_spec = pl.BlockSpec((C_out, C_in), lambda n, j: (0, 0), **wb_kw)
            b_spec = pl.BlockSpec((C_out, 1), lambda n, j: (0, 0), **wb_kw)
            dims = ("parallel", "parallel")

        return pl.pallas_call(
            kernel,
            out_shape=out_shape,
            grid_spec=pltpu.PrefetchScalarGridSpec(
                num_scalar_prefetch=0,
                grid=grid,
                in_specs=[x_spec, w_spec, b_spec],
                out_specs=o_spec,
            ),
            compiler_params=pltpu.CompilerParams(
                dimension_semantics=dims,       # independent axes: megacore on v7x
                vmem_limit_bytes=vmem_limit,
            ),
        )(x, w, b)

    try:
        out = call(True)
    except Exception:
        out = call(False)

    return out.reshape(N, C_out, H, W)


# ---------------------------------------------------------------------------
if __name__ == "__main__":
    key = jax.random.PRNGKey(0)
    k1, k2, k3, k4, k5, k6 = jax.random.split(key, 6)

    def ref_conv1x1(x, weight, bias):
        # Exact f32 reference (VPU math, no MXU precision ambiguity).
        co, ci = weight.shape[0], weight.shape[1]
        w2 = weight.reshape(co, ci)
        return (x[:, None] * w2[None, :, :, None, None]).sum(axis=2) \
            + bias[None, :, None, None]

    # Case 1: tiny channels -> VPU path, batch folded into the block.
    N, C_in, H, W, C_out = 2, 4, 16, 16, 8
    x = jax.random.normal(k1, (N, C_in, H, W), jnp.float32)
    wt = jax.random.normal(k2, (C_out, C_in, 1, 1), jnp.float32) * 0.1
    bs = jax.random.normal(k3, (C_out,), jnp.float32) * 0.1
    out = jax.block_until_ready(fpn_bottleneck_block(x, wt, bs))
    assert out.shape == (N, C_out, H, W)
    assert jnp.allclose(out, ref_conv1x1(x, wt, bs), atol=1e-5, rtol=1e-5)

    # Case 2: moderate channels -> MXU path, squeezed-batch (non-folded) specs.
    N2, C_in2, H2, W2, C_out2 = 1, 32, 16, 16, 16
    x2 = jax.random.normal(k4, (N2, C_in2, H2, W2), jnp.float32)
    wt2 = jax.random.normal(k5, (C_out2, C_in2, 1, 1), jnp.float32) * 0.1
    bs2 = jax.random.normal(k6, (C_out2,), jnp.float32) * 0.1
    out2 = jax.block_until_ready(fpn_bottleneck_block(x2, wt2, bs2))
    assert out2.shape == (N2, C_out2, H2, W2)
    # Loose tolerance: covers possible bf16-pass MXU rounding of f32 operands.
    assert jnp.allclose(out2, ref_conv1x1(x2, wt2, bs2), atol=1e-2, rtol=1e-2)

    print("KERNEL_OK")
</pallas_src>

<mosaic_0001>
module attributes {stable_mosaic.version = 11 : i64} {
  func.func @_conv1x1_vpu_kernel(%arg0: i32, %arg1: memref<2x4x256xf32, #tpu.memory_space<vmem>>, %arg2: memref<8x4xf32, #tpu.memory_space<vmem>>, %arg3: memref<8x1xf32, #tpu.memory_space<vmem>>, %arg4: memref<2x8x256xf32, #tpu.memory_space<vmem>>) attributes {dimension_semantics = [#tpu.dimension_semantics<parallel>], iteration_bounds = array<i64: 1>, scalar_prefetch = 0 : i64, scratch_operands = 0 : i64, tpu.core_type = #tpu.core_type<tc>, window_params = [{transform_indices = @transform_0, window_bounds = array<i64: 2, 4, 256>}, {pipeline_mode = #tpu.pipeline_mode<synchronous>, transform_indices = @transform_1, window_bounds = array<i64: 8, 4>}, {pipeline_mode = #tpu.pipeline_mode<synchronous>, transform_indices = @transform_2, window_bounds = array<i64: 8, 1>}, {transform_indices = @transform_3, window_bounds = array<i64: 2, 8, 256>}]} {
    %c0 = arith.constant 0 : index
    %c0_0 = arith.constant 0 : index
    %0 = vector.load %arg2[%c0, %c0_0] : memref<8x4xf32, #tpu.memory_space<vmem>>, vector<8x4xf32>
    %c0_1 = arith.constant 0 : index
    %c0_2 = arith.constant 0 : index
    %1 = vector.load %arg3[%c0_1, %c0_2] : memref<8x1xf32, #tpu.memory_space<vmem>>, vector<8x1xf32>
    %c0_3 = arith.constant 0 : index
    %c0_4 = arith.constant 0 : index
    %c0_5 = arith.constant 0 : index
    %2 = vector.load %arg1[%c0_3, %c0_4, %c0_5] : memref<2x4x256xf32, #tpu.memory_space<vmem>>, vector<1x4x256xf32>
    %3 = vector.shape_cast %2 : vector<1x4x256xf32> to vector<4x256xf32>
    %4 = vector.extract_strided_slice %0 {offsets = [0, 0], sizes = [8, 1], strides = [1, 1]} : vector<8x4xf32> to vector<8x1xf32>
    %5 = vector.extract_strided_slice %3 {offsets = [0, 0], sizes = [1, 256], strides = [1, 1]} : vector<4x256xf32> to vector<1x256xf32>
    %6 = vector.broadcast %4 : vector<8x1xf32> to vector<8x256xf32>
    %7 = vector.broadcast %5 : vector<1x256xf32> to vector<8x256xf32>
    %8 = arith.mulf %6, %7 : vector<8x256xf32>
    %9 = vector.broadcast %1 : vector<8x1xf32> to vector<8x256xf32>
    %10 = arith.addf %8, %9 : vector<8x256xf32>
    %11 = vector.extract_strided_slice %0 {offsets = [0, 1], sizes = [8, 1], strides = [1, 1]} : vector<8x4xf32> to vector<8x1xf32>
    %12 = vector.extract_strided_slice %3 {offsets = [1, 0], sizes = [1, 256], strides = [1, 1]} : vector<4x256xf32> to vector<1x256xf32>
    %13 = vector.broadcast %11 : vector<8x1xf32> to vector<8x256xf32>
    %14 = vector.broadcast %12 : vector<1x256xf32> to vector<8x256xf32>
    %15 = arith.mulf %13, %14 : vector<8x256xf32>
    %16 = arith.addf %10, %15 : vector<8x256xf32>
    %17 = vector.extract_strided_slice %0 {offsets = [0, 2], sizes = [8, 1], strides = [1, 1]} : vector<8x4xf32> to vector<8x1xf32>
    %18 = vector.extract_strided_slice %3 {offsets = [2, 0], sizes = [1, 256], strides = [1, 1]} : vector<4x256xf32> to vector<1x256xf32>
    %19 = vector.broadcast %17 : vector<8x1xf32> to vector<8x256xf32>
    %20 = vector.broadcast %18 : vector<1x256xf32> to vector<8x256xf32>
    %21 = arith.mulf %19, %20 : vector<8x256xf32>
    %22 = arith.addf %16, %21 : vector<8x256xf32>
    %23 = vector.extract_strided_slice %0 {offsets = [0, 3], sizes = [8, 1], strides = [1, 1]} : vector<8x4xf32> to vector<8x1xf32>
    %24 = vector.extract_strided_slice %3 {offsets = [3, 0], sizes = [1, 256], strides = [1, 1]} : vector<4x256xf32> to vector<1x256xf32>
    %25 = vector.broadcast %23 : vector<8x1xf32> to vector<8x256xf32>
    %26 = vector.broadcast %24 : vector<1x256xf32> to vector<8x256xf32>
    %27 = arith.mulf %25, %26 : vector<8x256xf32>
    %28 = arith.addf %22, %27 : vector<8x256xf32>
    %c0_6 = arith.constant 0 : index
    %c0_7 = arith.constant 0 : index
    %c0_8 = arith.constant 0 : index
    %29 = vector.load %arg4[%c0_6, %c0_7, %c0_8] : memref<2x8x256xf32, #tpu.memory_space<vmem>>, vector<1x8x256xf32>
    %30 = vector.shape_cast %29 : vector<1x8x256xf32> to vector<8x256xf32>
    %31 = vector.shape_cast %28 : vector<8x256xf32> to vector<1x8x256xf32>
    tpu.vector_store %arg4[%c0_6, %c0_7, %c0_8], %31 {strides = array<i32>} : memref<2x8x256xf32, #tpu.memory_space<vmem>>, vector<1x8x256xf32>,
    %c1 = arith.constant 1 : index
    %c0_9 = arith.constant 0 : index
    %c0_10 = arith.constant 0 : index
    %32 = vector.load %arg1[%c1, %c0_9, %c0_10] : memref<2x4x256xf32, #tpu.memory_space<vmem>>, vector<1x4x256xf32>
    %33 = vector.shape_cast %32 : vector<1x4x256xf32> to vector<4x256xf32>
    %34 = vector.extract_strided_slice %0 {offsets = [0, 0], sizes = [8, 1], strides = [1, 1]} : vector<8x4xf32> to vector<8x1xf32>
    %35 = vector.extract_strided_slice %33 {offsets = [0, 0], sizes = [1, 256], strides = [1, 1]} : vector<4x256xf32> to vector<1x256xf32>
    %36 = vector.broadcast %34 : vector<8x1xf32> to vector<8x256xf32>
    %37 = vector.broadcast %35 : vector<1x256xf32> to vector<8x256xf32>
    %38 = arith.mulf %36, %37 : vector<8x256xf32>
    %39 = vector.broadcast %1 : vector<8x1xf32> to vector<8x256xf32>
    %40 = arith.addf %38, %39 : vector<8x256xf32>
    %41 = vector.extract_strided_slice %0 {offsets = [0, 1], sizes = [8, 1], strides = [1, 1]} : vector<8x4xf32> to vector<8x1xf32>
    %42 = vector.extract_strided_slice %33 {offsets = [1, 0], sizes = [1, 256], strides = [1, 1]} : vector<4x256xf32> to vector<1x256xf32>
    %43 = vector.broadcast %41 : vector<8x1xf32> to vector<8x256xf32>
    %44 = vector.broadcast %42 : vector<1x256xf32> to vector<8x256xf32>
    %45 = arith.mulf %43, %44 : vector<8x256xf32>
    %46 = arith.addf %40, %45 : vector<8x256xf32>
    %47 = vector.extract_strided_slice %0 {offsets = [0, 2], sizes = [8, 1], strides = [1, 1]} : vector<8x4xf32> to vector<8x1xf32>
    %48 = vector.extract_strided_slice %33 {offsets = [2, 0], sizes = [1, 256], strides = [1, 1]} : vector<4x256xf32> to vector<1x256xf32>
    %49 = vector.broadcast %47 : vector<8x1xf32> to vector<8x256xf32>
    %50 = vector.broadcast %48 : vector<1x256xf32> to vector<8x256xf32>
    %51 = arith.mulf %49, %50 : vector<8x256xf32>
    %52 = arith.addf %46, %51 : vector<8x256xf32>
    %53 = vector.extract_strided_slice %0 {offsets = [0, 3], sizes = [8, 1], strides = [1, 1]} : vector<8x4xf32> to vector<8x1xf32>
    %54 = vector.extract_strided_slice %33 {offsets = [3, 0], sizes = [1, 256], strides = [1, 1]} : vector<4x256xf32> to vector<1x256xf32>
    %55 = vector.broadcast %53 : vector<8x1xf32> to vector<8x256xf32>
    %56 = vector.broadcast %54 : vector<1x256xf32> to vector<8x256xf32>
    %57 = arith.mulf %55, %56 : vector<8x256xf32>
    %58 = arith.addf %52, %57 : vector<8x256xf32>
    %c1_11 = arith.constant 1 : index
    %c0_12 = arith.constant 0 : index
    %c0_13 = arith.constant 0 : index
    %59 = vector.load %arg4[%c1_11, %c0_12, %c0_13] : memref<2x8x256xf32, #tpu.memory_space<vmem>>, vector<1x8x256xf32>
    %60 = vector.shape_cast %59 : vector<1x8x256xf32> to vector<8x256xf32>
    %61 = vector.shape_cast %58 : vector<8x256xf32> to vector<1x8x256xf32>
    tpu.vector_store %arg4[%c1_11, %c0_12, %c0_13], %61 {strides = array<i32>} : memref<2x8x256xf32, #tpu.memory_space<vmem>>, vector<1x8x256xf32>,
    return
  }
  func.func @transform_0(%arg0: i32) -> (i32, i32, i32) {
    %c0_i32 = arith.constant 0 : i32
    %c0_i32_0 = arith.constant 0 : i32
    %c0_i32_1 = arith.constant 0 : i32
    return %c0_i32, %c0_i32_0, %arg0 : i32, i32, i32
  }
  func.func @transform_1(%arg0: i32) -> (i32, i32) {
    %c0_i32 = arith.constant 0 : i32
    %c0_i32_0 = arith.constant 0 : i32
    %c0_i32_1 = arith.constant 0 : i32
    return %c0_i32, %c0_i32_0 : i32, i32
  }
  func.func @transform_2(%arg0: i32) -> (i32, i32) {
    %c0_i32 = arith.constant 0 : i32
    %c0_i32_0 = arith.constant 0 : i32
    %c0_i32_1 = arith.constant 0 : i32
    return %c0_i32, %c0_i32_0 : i32, i32
  }
  func.func @transform_3(%arg0: i32) -> (i32, i32, i32) {
    %c0_i32 = arith.constant 0 : i32
    %c0_i32_0 = arith.constant 0 : i32
    %c0_i32_1 = arith.constant 0 : i32
    return %c0_i32, %c0_i32_0, %arg0 : i32, i32, i32
  }
}

module attributes {stable_mosaic.version = 11 : i64} {
  func.func @_conv1x1_vpu_kernel(%arg0: i32, %arg1: memref<2x4x256xf32, #tpu.memory_space<vmem>>, %arg2: memref<8x4xf32, #tpu.memory_space<vmem>>, %arg3: memref<8x1xf32, #tpu.memory_space<vmem>>, %arg4: memref<2x8x256xf32, #tpu.memory_space<vmem>>) attributes {dimension_semantics = [#tpu.dimension_semantics<parallel>], iteration_bounds = array<i64: 1>, scalar_prefetch = 0 : i64, scratch_operands = 0 : i64, tpu.core_type = #tpu.core_type<tc>, window_params = [{transform_indices = @transform_0, window_bounds = array<i64: 2, 4, 256>}, {pipeline_mode = #tpu.pipeline_mode<synchronous>, transform_indices = @transform_1, window_bounds = array<i64: 8, 4>}, {pipeline_mode = #tpu.pipeline_mode<synchronous>, transform_indices = @transform_2, window_bounds = array<i64: 8, 1>}, {transform_indices = @transform_3, window_bounds = array<i64: 2, 8, 256>}]} {
    %c0 = arith.constant 0 : index
    %c0_0 = arith.constant 0 : index
    %0 = vector.load %arg2[%c0, %c0_0] : memref<8x4xf32, #tpu.memory_space<vmem>>, vector<8x4xf32>
    %c0_1 = arith.constant 0 : index
    %c0_2 = arith.constant 0 : index
    %1 = vector.load %arg3[%c0_1, %c0_2] : memref<8x1xf32, #tpu.memory_space<vmem>>, vector<8x1xf32>
    %c0_3 = arith.constant 0 : index
    %c0_4 = arith.constant 0 : index
    %c0_5 = arith.constant 0 : index
    %2 = vector.load %arg1[%c0_3, %c0_4, %c0_5] : memref<2x4x256xf32, #tpu.memory_space<vmem>>, vector<1x4x256xf32>
    %3 = vector.shape_cast %2 : vector<1x4x256xf32> to vector<4x256xf32>
    %4 = vector.extract_strided_slice %0 {offsets = [0, 0], sizes = [8, 1], strides = [1, 1]} : vector<8x4xf32> to vector<8x1xf32>
    %5 = vector.extract_strided_slice %3 {offsets = [0, 0], sizes = [1, 256], strides = [1, 1]} : vector<4x256xf32> to vector<1x256xf32>
    %6 = vector.broadcast %4 : vector<8x1xf32> to vector<8x256xf32>
    %7 = vector.broadcast %5 : vector<1x256xf32> to vector<8x256xf32>
    %8 = arith.mulf %6, %7 : vector<8x256xf32>
    %9 = vector.broadcast %1 : vector<8x1xf32> to vector<8x256xf32>
    %10 = arith.addf %8, %9 : vector<8x256xf32>
    %11 = vector.extract_strided_slice %0 {offsets = [0, 1], sizes = [8, 1], strides = [1, 1]} : vector<8x4xf32> to vector<8x1xf32>
    %12 = vector.extract_strided_slice %3 {offsets = [1, 0], sizes = [1, 256], strides = [1, 1]} : vector<4x256xf32> to vector<1x256xf32>
    %13 = vector.broadcast %11 : vector<8x1xf32> to vector<8x256xf32>
    %14 = vector.broadcast %12 : vector<1x256xf32> to vector<8x256xf32>
    %15 = arith.mulf %13, %14 : vector<8x256xf32>
    %16 = arith.addf %10, %15 : vector<8x256xf32>
    %17 = vector.extract_strided_slice %0 {offsets = [0, 2], sizes = [8, 1], strides = [1, 1]} : vector<8x4xf32> to vector<8x1xf32>
    %18 = vector.extract_strided_slice %3 {offsets = [2, 0], sizes = [1, 256], strides = [1, 1]} : vector<4x256xf32> to vector<1x256xf32>
    %19 = vector.broadcast %17 : vector<8x1xf32> to vector<8x256xf32>
    %20 = vector.broadcast %18 : vector<1x256xf32> to vector<8x256xf32>
    %21 = arith.mulf %19, %20 : vector<8x256xf32>
    %22 = arith.addf %16, %21 : vector<8x256xf32>
    %23 = vector.extract_strided_slice %0 {offsets = [0, 3], sizes = [8, 1], strides = [1, 1]} : vector<8x4xf32> to vector<8x1xf32>
    %24 = vector.extract_strided_slice %3 {offsets = [3, 0], sizes = [1, 256], strides = [1, 1]} : vector<4x256xf32> to vector<1x256xf32>
    %25 = vector.broadcast %23 : vector<8x1xf32> to vector<8x256xf32>
    %26 = vector.broadcast %24 : vector<1x256xf32> to vector<8x256xf32>
    %27 = arith.mulf %25, %26 : vector<8x256xf32>
    %28 = arith.addf %22, %27 : vector<8x256xf32>
    %c0_6 = arith.constant 0 : index
    %c0_7 = arith.constant 0 : index
    %c0_8 = arith.constant 0 : index
    %29 = vector.load %arg4[%c0_6, %c0_7, %c0_8] : memref<2x8x256xf32, #tpu.memory_space<vmem>>, vector<1x8x256xf32>
    %30 = vector.shape_cast %29 : vector<1x8x256xf32> to vector<8x256xf32>
    %31 = vector.shape_cast %28 : vector<8x256xf32> to vector<1x8x256xf32>
    tpu.vector_store %arg4[%c0_6, %c0_7, %c0_8], %31 {strides = array<i32>} : memref<2x8x256xf32, #tpu.memory_space<vmem>>, vector<1x8x256xf32>,
    %c1 = arith.constant 1 : index
    %c0_9 = arith.constant 0 : index
    %c0_10 = arith.constant 0 : index
    %32 = vector.load %arg1[%c1, %c0_9, %c0_10] : memref<2x4x256xf32, #tpu.memory_space<vmem>>, vector<1x4x256xf32>
    %33 = vector.shape_cast %32 : vector<1x4x256xf32> to vector<4x256xf32>
    %34 = vector.extract_strided_slice %0 {offsets = [0, 0], sizes = [8, 1], strides = [1, 1]} : vector<8x4xf32> to vector<8x1xf32>
    %35 = vector.extract_strided_slice %33 {offsets = [0, 0], sizes = [1, 256], strides = [1, 1]} : vector<4x256xf32> to vector<1x256xf32>
    %36 = vector.broadcast %34 : vector<8x1xf32> to vector<8x256xf32>
    %37 = vector.broadcast %35 : vector<1x256xf32> to vector<8x256xf32>
    %38 = arith.mulf %36, %37 : vector<8x256xf32>
    %39 = vector.broadcast %1 : vector<8x1xf32> to vector<8x256xf32>
    %40 = arith.addf %38, %39 : vector<8x256xf32>
    %41 = vector.extract_strided_slice %0 {offsets = [0, 1], sizes = [8, 1], strides = [1, 1]} : vector<8x4xf32> to vector<8x1xf32>
    %42 = vector.extract_strided_slice %33 {offsets = [1, 0], sizes = [1, 256], strides = [1, 1]} : vector<4x256xf32> to vector<1x256xf32>
    %43 = vector.broadcast %41 : vector<8x1xf32> to vector<8x256xf32>
    %44 = vector.broadcast %42 : vector<1x256xf32> to vector<8x256xf32>
    %45 = arith.mulf %43, %44 : vector<8x256xf32>
    %46 = arith.addf %40, %45 : vector<8x256xf32>
    %47 = vector.extract_strided_slice %0 {offsets = [0, 2], sizes = [8, 1], strides = [1, 1]} : vector<8x4xf32> to vector<8x1xf32>
    %48 = vector.extract_strided_slice %33 {offsets = [2, 0], sizes = [1, 256], strides = [1, 1]} : vector<4x256xf32> to vector<1x256xf32>
    %49 = vector.broadcast %47 : vector<8x1xf32> to vector<8x256xf32>
    %50 = vector.broadcast %48 : vector<1x256xf32> to vector<8x256xf32>
    %51 = arith.mulf %49, %50 : vector<8x256xf32>
    %52 = arith.addf %46, %51 : vector<8x256xf32>
    %53 = vector.extract_strided_slice %0 {offsets = [0, 3], sizes = [8, 1], strides = [1, 1]} : vector<8x4xf32> to vector<8x1xf32>
    %54 = vector.extract_strided_slice %33 {offsets = [3, 0], sizes = [1, 256], strides = [1, 1]} : vector<4x256xf32> to vector<1x256xf32>
    %55 = vector.broadcast %53 : vector<8x1xf32> to vector<8x256xf32>
    %56 = vector.broadcast %54 : vector<1x256xf32> to vector<8x256xf32>
    %57 = arith.mulf %55, %56 : vector<8x256xf32>
    %58 = arith.addf %52, %57 : vector<8x256xf32>
    %c1_11 = arith.constant 1 : index
    %c0_12 = arith.constant 0 : index
    %c0_13 = arith.constant 0 : index
    %59 = vector.load %arg4[%c1_11, %c0_12, %c0_13] : memref<2x8x256xf32, #tpu.memory_space<vmem>>, vector<1x8x256xf32>
    %60 = vector.shape_cast %59 : vector<1x8x256xf32> to vector<8x256xf32>
    %61 = vector.shape_cast %58 : vector<8x256xf32> to vector<1x8x256xf32>
    tpu.vector_store %arg4[%c1_11, %c0_12, %c0_13], %61 {strides = array<i32>} : memref<2x8x256xf32, #tpu.memory_space<vmem>>, vector<1x8x256xf32>,
    return
  }
  func.func @transform_0(%arg0: i32) -> (i32, i32, i32) {
    %c0_i32 = arith.constant 0 : i32
    %c0_i32_0 = arith.constant 0 : i32
    %c0_i32_1 = arith.constant 0 : i32
    return %c0_i32, %c0_i32_0, %arg0 : i32, i32, i32
  }
  func.func @transform_1(%arg0: i32) -> (i32, i32) {
    %c0_i32 = arith.constant 0 : i32
    %c0_i32_0 = arith.constant 0 : i32
    %c0_i32_1 = arith.constant 0 : i32
    return %c0_i32, %c0_i32_0 : i32, i32
  }
  func.func @transform_2(%arg0: i32) -> (i32, i32) {
    %c0_i32 = arith.constant 0 : i32
    %c0_i32_0 = arith.constant 0 : i32
    %c0_i32_1 = arith.constant 0 : i32
    return %c0_i32, %c0_i32_0 : i32, i32
  }
  func.func @transform_3(%arg0: i32) -> (i32, i32, i32) {
    %c0_i32 = arith.constant 0 : i32
    %c0_i32_0 = arith.constant 0 : i32
    %c0_i32_1 = arith.constant 0 : i32
    return %c0_i32, %c0_i32_0, %arg0 : i32, i32, i32
  }
}

</mosaic_0001>

<bundles_post_ra>
// kernel: tpu_custom_call.1
= control target key start
LH: loop header
LB: loop body
LE: loop exit
PB: predicated region body
PF: predicated region fallthrough
CT: control target
= control target key end

     0   :  { %v186_v1 = vmov 0   ;;  %v187_v2 = vmov 1   ;;  %s228_s0 = inlined_call_operand.vmem [shape: f32[2,4,256], index: 0, kind: input, shape index: {}]   ;;  %s229_s1 = inlined_call_operand.vmem [shape: f32[8,4], index: 1, kind: input, shape index: {}]   ;;  %s230_s2 = inlined_call_operand.vmem [shape: f32[8,1], index: 2, kind: input, shape index: {}]   ;;  %s231_s3 = inlined_call_operand.hbm [shape: f32[2,8,256], index: 3, kind: output, shape index: {}]  }
   0x1   :  { %v15_v0 = vld [vmem:[%s229_s1] sm:$0xff]  ;;  %155 = vset.pattern.permute.xlu0 %v186_v1  ;;  %156 = vset.pattern.permute.xlu1 %v187_v2 }
   0x2   :  { %8 = vsyncpa [#allocation3], 0  ;;  %20 = vperm.xlu0 %155, %v15_v0   ;;  %40 = vperm.xlu1 %156, %v15_v0   ;;  %v188_v3 = vmov 3   ;;  %v16_v4 = vld [vmem:[%s230_s2] sm:$0xff]  ;;  %v189_v5 = vmov 2   ;;  %v147_v7 = vld [vmem:[%s228_s0 + $0x8] sm:$0xff] }
   0x3   :  { %158 = vset.pattern.permute.xlu2 %v188_v3  ;;  %v17_v6 = vld [vmem:[%s228_s0] sm:$0xff]  ;;  %v116_v10 = vperm.slane %v147_v7, 3  ;;  %v86_v13 = vperm.slane %v147_v7, 0  ;;  %v87_v14 = vperm.slane %v147_v7, 4  ;;  %v96_v18 = vperm.slane %v147_v7, 1  ;;  %s190_s0 = smov [#allocation2]  }
   0x4   :  { %68 = vperm.xlu2 %158, %v15_v0   ;;  %v71_v8 = vperm.slane %v17_v6, 3  ;;  %v72_v9 = vperm.slane %v17_v6, 7  ;;  %v24_v11 = vperm.slane %v17_v6, 0  ;;  %v25_v12 = vperm.slane %v17_v6, 4  ;;  %s133_s2 = sshll.u32 %s190_s0, 4  ;;  %s135_s21 = sshll.u32 %s231_s3, 4  ;;  %s134_s2 = int_to_ptr.vmem [resolvable:$true] %s133_s2  ;;  %s136_s21 = int_to_ptr.hbm [resolvable:$true] %s135_s21 }
   0x5   :  { %v43_v16 = vperm.slane %v17_v6, 1  ;;  %v44_v17 = vperm.slane %v17_v6, 5  ;;  %v97_v19 = vperm.slane %v147_v7, 5  ;;  %v57_v21 = vperm.slane %v17_v6, 2  ;;  %s191_s22 = smov 256   ;;  %s192_s23 = smov 16  }
   0x6   :  { %v58_v22 = vperm.slane %v17_v6, 6  ;;  %v106_v23 = vperm.slane %v147_v7, 2  ;;  %v107_v24 = vperm.slane %v147_v7, 6  ;;  %v75_v25 = vperm.slane %v71_v8, 3 }
   0x7   :  { %v76_v26 = vperm.slane %v72_v9, 3  ;;  %v117_v27 = vperm.slane %v147_v7, 7  ;;  %v120_v28 = vperm.slane %v116_v10, 3  ;;  %v28_v29 = vperm.slane %v24_v11, 0 }
   0x8   :  { %v29_v30 = vperm.slane %v25_v12, 0  ;;  %v90_v31 = vperm.slane %v86_v13, 0  ;;  %v91_v32 = vperm.slane %v87_v14, 0  ;;  %v47_v34 = vperm.slane %v43_v16, 1 }
   0x9   :  { %v48_v35 = vperm.slane %v44_v17, 1  ;;  %v100_v36 = vperm.slane %v96_v18, 1  ;;  %v101_v37 = vperm.slane %v97_v19, 1  ;;  %v61_v38 = vperm.slane %v57_v21, 2 }
   0xa   :  { %34 = vperm.xlu0 %155, %v16_v4   ;;  %157 = vset.pattern.permute.xlu1 %v189_v5  ;;  %v62_v39 = vperm.slane %v58_v22, 2  ;;  %v110_v40 = vperm.slane %v106_v23, 2  ;;  %v111_v41 = vperm.slane %v107_v24, 2  ;;  %v121_v42 = vperm.slane %v117_v27, 3 }
   0xb   :  { %54 = vperm.xlu1 %157, %v15_v0  }
  0x12   :  { %159 = vset.pattern.permute.xlu0 %v188_v3 }
  0x5e   :  { %v69_v33 = vpop.permute.xlu2 %68 }
  0x5f   :  { %v77_v43 = vmul.f32 %v75_v25, %v69_v33  ;;  %v78_v44 = vmul.f32 %v76_v26, %v69_v33  ;;  %v122_v45 = vmul.f32 %v120_v28, %v69_v33  ;;  %v123_v4 = vmul.f32 %v121_v42, %v69_v33 }
  0x74   :  { %v21_v15 = vpop.permute.xlu0 %20  ;;  %v41_v20 = vpop.permute.xlu1 %40 }
  0x75   :  { %v30_v46 = vmul.f32 %v28_v29, %v21_v15  ;;  %v31_v47 = vmul.f32 %v29_v30, %v21_v15  ;;  %v92_v48 = vmul.f32 %v90_v31, %v21_v15  ;;  %v93_v49 = vmul.f32 %v91_v32, %v21_v15 }
  0x76   :  { %v49_v50 = vmul.f32 %v47_v34, %v41_v20  ;;  %v50_v51 = vmul.f32 %v48_v35, %v41_v20  ;;  %v102_v52 = vmul.f32 %v100_v36, %v41_v20  ;;  %v103_v53 = vmul.f32 %v101_v37, %v41_v20 }
  0x7c   :  { %v35_v54 = vpop.permute.xlu0 %34 }
  0x7d   :  { %v37_v55 = vadd.f32 %v35_v54, %v30_v46  ;;  %v38_v56 = vadd.f32 %v35_v54, %v31_v47  ;;  %v94_v57 = vadd.f32 %v92_v48, %v35_v54  ;;  %v95_v58 = vadd.f32 %v93_v49, %v35_v54  ;;  %v55_v59 = vpop.permute.xlu1 %54 }
  0x7e   :  { %v63_v60 = vmul.f32 %v61_v38, %v55_v59  ;;  %v64_v61 = vmul.f32 %v62_v39, %v55_v59  ;;  %v112_v62 = vmul.f32 %v110_v40, %v55_v59  ;;  %v113_v63 = vmul.f32 %v111_v41, %v55_v59 }
  0x7f   :  { %v51_v0 = vadd.f32 %v49_v50, %v37_v55  ;;  %v52_v1 = vadd.f32 %v50_v51, %v38_v56  ;;  %v104_v2 = vadd.f32 %v102_v52, %v94_v57  ;;  %v105_v3 = vadd.f32 %v103_v53, %v95_v58 }
  0x81   :  { %v65_v5 = vadd.f32 %v63_v60, %v51_v0  ;;  %v66_v6 = vadd.f32 %v64_v61, %v52_v1  ;;  %v114_v7 = vadd.f32 %v112_v62, %v104_v2  ;;  %v115_v8 = vadd.f32 %v113_v63, %v105_v3 }
  0x83   :  { %v79_v9 = vadd.f32 %v77_v43, %v65_v5  ;;  %v80_v10 = vadd.f32 %v78_v44, %v66_v6  ;;  %v124_v11 = vadd.f32 %v122_v45, %v114_v7  ;;  %v125_v12 = vadd.f32 %v123_v4, %v115_v8 }
  0x85   :  { %81 = vst [vmem:[#allocation2] sm:$0xff] %v79_v9 }
  0x86   :  { %82 = vst [vmem:[#allocation2 + $0x8] sm:$0xff] %v80_v10 }
  0x87   :  { %127 = vst [vmem:[#allocation2 + $0x10] sm:$0xff] %v124_v11 }
  0x88   :  { %128 = vst [vmem:[#allocation2 + $0x18] sm:$0xff] %v125_v12 }
  0x89   :  { %141 = dma.vmem_to_hbm [thread:$0]  %s134_s2, 512, %s136_s21, [#allocation3], %s191_s22, %s191_s22, %s192_s23  }
  0x8a   :  { %184 = dma.done.wait [#allocation3], 512  }
  0x8b   :  { %185 = vsyncadd [#allocation3], 4294966784 }
  0x8c   :  { %146 = vsyncpa [#allocation3], 1 }

// kernel: tpu_custom_call.1
= control target key start
LH: loop header
LB: loop body
LE: loop exit
PB: predicated region body
PF: predicated region fallthrough
CT: control target
= control target key end

     0   :  { %v186_v1 = vmov 0   ;;  %v187_v2 = vmov 1   ;;  %s228_s0 = inlined_call_operand.vmem [shape: f32[2,4,256], index: 0, kind: input, shape index: {}]   ;;  %s229_s1 = inlined_call_operand.vmem [shape: f32[8,4], index: 1, kind: input, shape index: {}]   ;;  %s230_s2 = inlined_call_operand.vmem [shape: f32[8,1], index: 2, kind: input, shape index: {}]   ;;  %s231_s3 = inlined_call_operand.hbm [shape: f32[2,8,256], index: 3, kind: output, shape index: {}]  }
   0x1   :  { %v15_v0 = vld [vmem:[%s229_s1] sm:$0xff]  ;;  %155 = vset.pattern.permute.xlu0 %v186_v1  ;;  %156 = vset.pattern.permute.xlu1 %v187_v2 }
   0x2   :  { %8 = vsyncpa [#allocation3], 0  ;;  %20 = vperm.xlu0 %155, %v15_v0   ;;  %40 = vperm.xlu1 %156, %v15_v0   ;;  %v188_v3 = vmov 3   ;;  %v16_v4 = vld [vmem:[%s230_s2] sm:$0xff]  ;;  %v189_v5 = vmov 2   ;;  %v147_v7 = vld [vmem:[%s228_s0 + $0x8] sm:$0xff] }
   0x3   :  { %158 = vset.pattern.permute.xlu2 %v188_v3  ;;  %v17_v6 = vld [vmem:[%s228_s0] sm:$0xff]  ;;  %v116_v10 = vperm.slane %v147_v7, 3  ;;  %v86_v13 = vperm.slane %v147_v7, 0  ;;  %v87_v14 = vperm.slane %v147_v7, 4  ;;  %v96_v18 = vperm.slane %v147_v7, 1  ;;  %s190_s0 = smov [#allocation2]  }
   0x4   :  { %68 = vperm.xlu2 %158, %v15_v0   ;;  %v71_v8 = vperm.slane %v17_v6, 3  ;;  %v72_v9 = vperm.slane %v17_v6, 7  ;;  %v24_v11 = vperm.slane %v17_v6, 0  ;;  %v25_v12 = vperm.slane %v17_v6, 4  ;;  %s133_s2 = sshll.u32 %s190_s0, 4  ;;  %s135_s21 = sshll.u32 %s231_s3, 4  ;;  %s134_s2 = int_to_ptr.vmem [resolvable:$true] %s133_s2  ;;  %s136_s21 = int_to_ptr.hbm [resolvable:$true] %s135_s21 }
   0x5   :  { %v43_v16 = vperm.slane %v17_v6, 1  ;;  %v44_v17 = vperm.slane %v17_v6, 5  ;;  %v97_v19 = vperm.slane %v147_v7, 5  ;;  %v57_v21 = vperm.slane %v17_v6, 2  ;;  %s191_s22 = smov 256   ;;  %s192_s23 = smov 16  }
   0x6   :  { %v58_v22 = vperm.slane %v17_v6, 6  ;;  %v106_v23 = vperm.slane %v147_v7, 2  ;;  %v107_v24 = vperm.slane %v147_v7, 6  ;;  %v75_v25 = vperm.slane %v71_v8, 3 }
   0x7   :  { %v76_v26 = vperm.slane %v72_v9, 3  ;;  %v117_v27 = vperm.slane %v147_v7, 7  ;;  %v120_v28 = vperm.slane %v116_v10, 3  ;;  %v28_v29 = vperm.slane %v24_v11, 0 }
   0x8   :  { %v29_v30 = vperm.slane %v25_v12, 0  ;;  %v90_v31 = vperm.slane %v86_v13, 0  ;;  %v91_v32 = vperm.slane %v87_v14, 0  ;;  %v47_v34 = vperm.slane %v43_v16, 1 }
   0x9   :  { %v48_v35 = vperm.slane %v44_v17, 1  ;;  %v100_v36 = vperm.slane %v96_v18, 1  ;;  %v101_v37 = vperm.slane %v97_v19, 1  ;;  %v61_v38 = vperm.slane %v57_v21, 2 }
   0xa   :  { %34 = vperm.xlu0 %155, %v16_v4   ;;  %157 = vset.pattern.permute.xlu1 %v189_v5  ;;  %v62_v39 = vperm.slane %v58_v22, 2  ;;  %v110_v40 = vperm.slane %v106_v23, 2  ;;  %v111_v41 = vperm.slane %v107_v24, 2  ;;  %v121_v42 = vperm.slane %v117_v27, 3 }
   0xb   :  { %54 = vperm.xlu1 %157, %v15_v0  }
  0x12   :  { %159 = vset.pattern.permute.xlu0 %v188_v3 }
  0x5e   :  { %v69_v33 = vpop.permute.xlu2 %68 }
  0x5f   :  { %v77_v43 = vmul.f32 %v75_v25, %v69_v33  ;;  %v78_v44 = vmul.f32 %v76_v26, %v69_v33  ;;  %v122_v45 = vmul.f32 %v120_v28, %v69_v33  ;;  %v123_v4 = vmul.f32 %v121_v42, %v69_v33 }
  0x74   :  { %v21_v15 = vpop.permute.xlu0 %20  ;;  %v41_v20 = vpop.permute.xlu1 %40 }
  0x75   :  { %v30_v46 = vmul.f32 %v28_v29, %v21_v15  ;;  %v31_v47 = vmul.f32 %v29_v30, %v21_v15  ;;  %v92_v48 = vmul.f32 %v90_v31, %v21_v15  ;;  %v93_v49 = vmul.f32 %v91_v32, %v21_v15 }
  0x76   :  { %v49_v50 = vmul.f32 %v47_v34, %v41_v20  ;;  %v50_v51 = vmul.f32 %v48_v35, %v41_v20  ;;  %v102_v52 = vmul.f32 %v100_v36, %v41_v20  ;;  %v103_v53 = vmul.f32 %v101_v37, %v41_v20 }
  0x7c   :  { %v35_v54 = vpop.permute.xlu0 %34 }
  0x7d   :  { %v37_v55 = vadd.f32 %v35_v54, %v30_v46  ;;  %v38_v56 = vadd.f32 %v35_v54, %v31_v47  ;;  %v94_v57 = vadd.f32 %v92_v48, %v35_v54  ;;  %v95_v58 = vadd.f32 %v93_v49, %v35_v54  ;;  %v55_v59 = vpop.permute.xlu1 %54 }
  0x7e   :  { %v63_v60 = vmul.f32 %v61_v38, %v55_v59  ;;  %v64_v61 = vmul.f32 %v62_v39, %v55_v59  ;;  %v112_v62 = vmul.f32 %v110_v40, %v55_v59  ;;  %v113_v63 = vmul.f32 %v111_v41, %v55_v59 }
  0x7f   :  { %v51_v0 = vadd.f32 %v49_v50, %v37_v55  ;;  %v52_v1 = vadd.f32 %v50_v51, %v38_v56  ;;  %v104_v2 = vadd.f32 %v102_v52, %v94_v57  ;;  %v105_v3 = vadd.f32 %v103_v53, %v95_v58 }
  0x81   :  { %v65_v5 = vadd.f32 %v63_v60, %v51_v0  ;;  %v66_v6 = vadd.f32 %v64_v61, %v52_v1  ;;  %v114_v7 = vadd.f32 %v112_v62, %v104_v2  ;;  %v115_v8 = vadd.f32 %v113_v63, %v105_v3 }
  0x83   :  { %v79_v9 = vadd.f32 %v77_v43, %v65_v5  ;;  %v80_v10 = vadd.f32 %v78_v44, %v66_v6  ;;  %v124_v11 = vadd.f32 %v122_v45, %v114_v7  ;;  %v125_v12 = vadd.f32 %v123_v4, %v115_v8 }
  0x85   :  { %81 = vst [vmem:[#allocation2] sm:$0xff] %v79_v9 }
  0x86   :  { %82 = vst [vmem:[#allocation2 + $0x8] sm:$0xff] %v80_v10 }
  0x87   :  { %127 = vst [vmem:[#allocation2 + $0x10] sm:$0xff] %v124_v11 }
  0x88   :  { %128 = vst [vmem:[#allocation2 + $0x18] sm:$0xff] %v125_v12 }
  0x89   :  { %141 = dma.vmem_to_hbm [thread:$0]  %s134_s2, 512, %s136_s21, [#allocation3], %s191_s22, %s191_s22, %s192_s23  }
  0x8a   :  { %184 = dma.done.wait [#allocation3], 512  }
  0x8b   :  { %185 = vsyncadd [#allocation3], 4294966784 }
  0x8c   :  { %146 = vsyncpa [#allocation3], 1 }

</bundles_post_ra>
